<compile_context>
chip_gen: v5e
topology: v5e:2x2
jax: 0.10.0
libtpu: 0.0.40
codegen_flags: <defaults>
</compile_context>

<pallas_src>
import jax
import jax.numpy as jnp
from jax import lax
from jax.experimental import pallas as pl
from jax.experimental.pallas import tpu as pltpu  # noqa: F401  (kept for TPU-specific tuning)
import numpy as np

# ---------------- config (small, consistent with the module) ----------------
CFG = dict(emb_dim=32, context_length=8, n_heads=4, drop_rate=0.0, qkv_bias=True)
B, T, E = 2, CFG["context_length"], CFG["emb_dim"]
H = CFG["n_heads"]
DH = E // H
HID = 4 * E
BT = B * T
EPS = 1e-5
NEG_INF = -1e30  # finite additive mask value (no -inf NaN hazard)


# ---------------- in-kernel helpers ----------------
def _layernorm(x, scale, shift):
    mean = jnp.mean(x, axis=-1, keepdims=True)
    var = jnp.mean((x - mean) ** 2, axis=-1, keepdims=True)  # unbiased=False
    return scale * ((x - mean) / jnp.sqrt(var + EPS)) + shift


def _gelu(x):
    c = jnp.sqrt(2.0 / jnp.pi).astype(x.dtype)
    return 0.5 * x * (1.0 + jnp.tanh(c * (x + 0.044715 * (x * x * x))))


# ---------------- the Pallas kernel (one invocation processes the whole batch) ----------------
def transformer_block_kernel(
    x_ref,      # (B*T, E)
    lnv_ref,    # (6, E): rows = ln1_scale, ln1_shift, ln2_scale, ln2_shift, bo, b2
    mask_ref,   # (H*B*T, B*T): precomputed block-diagonal causal additive mask, tiled per head
    wqkv_ref,   # (E, 3*E): [Wq (pre-scaled) | Wk | Wv]
    bqkv_ref,   # (1, 3*E): [bq (pre-scaled) | bk | bv]
    wo_ref,     # (E, E)
    w1_ref,     # (E, HID)
    b1_ref,     # (1, HID)
    w2_ref,     # (HID, E)
    o_ref,      # (B*T, E)
):
    x = x_ref[...]        # (BT, E)
    lnv = lnv_ref[...]    # (6, E)  -- static sublane slices below are cheap

    # ---- norm1 ----
    xn = _layernorm(x, lnv[0:1], lnv[1:2])

    # ---- fused QKV projection: one (BT, E) @ (E, 3E) matmul ----
    qkv = jnp.dot(xn, wqkv_ref[...], preferred_element_type=jnp.float32) + bqkv_ref[...]

    # ---- per-head scores (static lane slices; 1/sqrt(DH) already folded into Q) ----
    s_list = []
    for h in range(H):  # static unroll
        q_h = qkv[:, h * DH:(h + 1) * DH]              # (BT, DH)
        k_h = qkv[:, E + h * DH:E + (h + 1) * DH]      # (BT, DH)
        s_h = lax.dot_general(q_h, k_h, (((1,), (1,)), ((), ())),
                              preferred_element_type=jnp.float32)  # (BT, BT)
        s_list.append(s_h)

    # ---- softmax batched over all heads: (H*BT, BT) ----
    s_all = jnp.concatenate(s_list, axis=0) + mask_ref[...]
    s_all = s_all - jnp.max(s_all, axis=-1, keepdims=True)
    p_all = jnp.exp(s_all)
    p_all = p_all * pl.reciprocal(jnp.sum(p_all, axis=-1, keepdims=True), approx=True)
    # TODO(synk): attention-weight dropout omitted (drop_rate=0 / eval mode).

    # ---- per-head context, lane-concatenated, then ONE fused output projection ----
    ctx_list = []
    for h in range(H):
        v_h = qkv[:, 2 * E + h * DH:2 * E + (h + 1) * DH]          # (BT, DH)
        p_h = p_all[h * BT:(h + 1) * BT, :]                        # (BT, BT)
        ctx_list.append(jnp.dot(p_h, v_h, preferred_element_type=jnp.float32))
    ctx = jnp.concatenate(ctx_list, axis=-1)                       # (BT, E)

    attn = jnp.dot(ctx, wo_ref[...], preferred_element_type=jnp.float32) + lnv[4:5]

    # (identity) dropout + residual
    x1 = attn + x

    # ---- norm2 + feed-forward ----
    x2n = _layernorm(x1, lnv[2:3], lnv[3:4])
    h1 = _gelu(jnp.dot(x2n, w1_ref[...], preferred_element_type=jnp.float32) + b1_ref[...])
    ff = jnp.dot(h1, w2_ref[...], preferred_element_type=jnp.float32) + lnv[5:6]

    # (identity) dropout + residual
    o_ref[...] = (ff + x1).astype(o_ref.dtype)


# ---------------- wrapper ----------------
def _build_mask():
    # Block-diagonal (per batch element) causal additive mask over flattened B*T rows,
    # tiled H times along sublanes so it can be added once to the stacked per-head scores.
    row = np.arange(BT)[:, None]
    col = np.arange(BT)[None, :]
    same_batch = (row // T) == (col // T)
    causal = (col % T) <= (row % T)
    mask = np.where(same_batch & causal, 0.0, NEG_INF).astype(np.float32)  # (BT, BT)
    return jnp.asarray(np.tile(mask, (H, 1)))                              # (H*BT, BT)


def transformer_block(x, params):
    (ln1_s, ln1_b, wq, bq, wk, bk, wv, bv, wo, bo,
     ln2_s, ln2_b, w1, b1, w2, b2) = params

    scale = float(1.0 / np.sqrt(DH))

    # Fused 2-D QKV layout (free layout plumbing outside the kernel); 1/sqrt(DH) folded into Q.
    wqkv2d = jnp.concatenate([wq * scale, wk, wv], axis=1)   # (E, 3E)
    bqkv2d = jnp.concatenate([bq * scale, bk, bv], axis=1)   # (1, 3E)
    lnv = jnp.concatenate([ln1_s, ln1_b, ln2_s, ln2_b, bo, b2], axis=0)  # (6, E)
    mask_all = _build_mask()                                 # (H*BT, BT)

    x2d = x.reshape(BT, E)                                   # fold batch into M dim

    def full(shape):
        n = len(shape)
        return pl.BlockSpec(shape, lambda i, _n=n: (0,) * _n)

    out = pl.pallas_call(
        transformer_block_kernel,
        out_shape=jax.ShapeDtypeStruct((BT, E), jnp.float32),
        grid=(1,),
        in_specs=[
            full((BT, E)),        # x
            full((6, E)),         # packed LN params + bo + b2
            full((H * BT, BT)),   # precomputed additive mask (all heads)
            full((E, 3 * E)),     # fused QKV weights
            full((1, 3 * E)),     # fused QKV biases
            full((E, E)),         # Wo
            full((E, HID)),       # W1
            full((1, HID)),       # b1
            full((HID, E)),       # W2
        ],
        out_specs=full((BT, E)),
    )(x2d, lnv, mask_all, wqkv2d, bqkv2d, wo, w1, b1, w2)
    return out.reshape(B, T, E)


# ---------------- pure-JAX reference (mirrors the PyTorch forward) ----------------
def reference(x, params):
    (ln1_s, ln1_b, wq, bq, wk, bk, wv, bv, wo, bo,
     ln2_s, ln2_b, w1, b1, w2, b2) = params

    def ln(x, s, sh):
        m = x.mean(-1, keepdims=True)
        v = ((x - m) ** 2).mean(-1, keepdims=True)
        return s * (x - m) / jnp.sqrt(v + EPS) + sh

    def gelu(x):
        return 0.5 * x * (1 + jnp.tanh(jnp.sqrt(2.0 / jnp.pi) * (x + 0.044715 * x ** 3)))

    sc = x
    xn = ln(x, ln1_s, ln1_b)
    q = xn @ wq + bq
    k = xn @ wk + bk
    v = xn @ wv + bv
    q = q.reshape(B, T, H, DH).transpose(0, 2, 1, 3)
    k = k.reshape(B, T, H, DH).transpose(0, 2, 1, 3)
    v = v.reshape(B, T, H, DH).transpose(0, 2, 1, 3)
    s = jnp.einsum("bhqd,bhkd->bhqk", q, k) / jnp.sqrt(DH)
    mask = jnp.triu(jnp.ones((T, T), bool), 1)
    s = jnp.where(mask, -jnp.inf, s)
    p = jax.nn.softmax(s, axis=-1)
    ctx = jnp.einsum("bhqk,bhkd->bhqd", p, v).transpose(0, 2, 1, 3).reshape(B, T, E)
    x1 = ctx @ wo + bo + sc
    x2n = ln(x1, ln2_s, ln2_b)
    ff = gelu(x2n @ w1 + b1) @ w2 + b2
    return ff + x1


# ---------------- deterministic params & run ----------------
def make_params(key):
    ks = jax.random.split(key, 8)
    f = jnp.float32
    ln1_s = jnp.ones((1, E), f)
    ln1_b = jnp.zeros((1, E), f)
    ln2_s = jnp.ones((1, E), f)
    ln2_b = jnp.zeros((1, E), f)
    wq = jax.random.normal(ks[0], (E, E), f) * 0.05
    wk = jax.random.normal(ks[1], (E, E), f) * 0.05
    wv = jax.random.normal(ks[2], (E, E), f) * 0.05
    wo = jax.random.normal(ks[3], (E, E), f) * 0.05
    bq = jax.random.normal(ks[4], (1, E), f) * 0.01
    bk = jax.random.normal(ks[5], (1, E), f) * 0.01
    bv = jax.random.normal(ks[6], (1, E), f) * 0.01
    bo = jnp.zeros((1, E), f)
    w1 = jax.random.normal(ks[7], (E, HID), f) * 0.05
    b1 = jnp.zeros((1, HID), f)
    w2 = jax.random.normal(jax.random.fold_in(key, 99), (HID, E), f) * 0.05
    b2 = jnp.zeros((1, E), f)
    return (ln1_s, ln1_b, wq, bq, wk, bk, wv, bv, wo, bo,
            ln2_s, ln2_b, w1, b1, w2, b2)


if __name__ == "__main__":
    key = jax.random.PRNGKey(0)
    kx, kp = jax.random.split(key)
    x = jax.random.normal(kx, (B, T, E), jnp.float32)
    params = make_params(kp)

    out = jax.block_until_ready(transformer_block(x, params))
    ref = reference(x, params)

    # tolerance 1e-3 absorbs the EUP approximate-reciprocal softmax denominator
    # (pl.reciprocal(..., approx=True)) and default-precision MXU matmuls.
    np.testing.assert_allclose(np.asarray(out), np.asarray(ref), rtol=1e-3, atol=1e-3)

    print("KERNEL_OK")
</pallas_src>

<mosaic_0001>
module attributes {stable_mosaic.version = 11 : i64} {
  func.func @transformer_block_kernel(%arg0: i32, %arg1: memref<16x32xf32, #tpu.memory_space<vmem>>, %arg2: memref<6x32xf32, #tpu.memory_space<vmem>>, %arg3: memref<64x16xf32, #tpu.memory_space<vmem>>, %arg4: memref<32x96xf32, #tpu.memory_space<vmem>>, %arg5: memref<1x96xf32, #tpu.memory_space<vmem>>, %arg6: memref<32x32xf32, #tpu.memory_space<vmem>>, %arg7: memref<32x128xf32, #tpu.memory_space<vmem>>, %arg8: memref<1x128xf32, #tpu.memory_space<vmem>>, %arg9: memref<128x32xf32, #tpu.memory_space<vmem>>, %arg10: memref<16x32xf32, #tpu.memory_space<vmem>>) attributes {dimension_semantics = [#tpu.dimension_semantics<arbitrary>], iteration_bounds = array<i64: 1>, scalar_prefetch = 0 : i64, scratch_operands = 0 : i64, tpu.core_type = #tpu.core_type<tc>, window_params = [{pipeline_mode = #tpu.pipeline_mode<synchronous>, transform_indices = @transform_0, window_bounds = array<i64: 16, 32>}, {pipeline_mode = #tpu.pipeline_mode<synchronous>, transform_indices = @transform_1, window_bounds = array<i64: 6, 32>}, {pipeline_mode = #tpu.pipeline_mode<synchronous>, transform_indices = @transform_2, window_bounds = array<i64: 64, 16>}, {pipeline_mode = #tpu.pipeline_mode<synchronous>, transform_indices = @transform_3, window_bounds = array<i64: 32, 96>}, {pipeline_mode = #tpu.pipeline_mode<synchronous>, transform_indices = @transform_4, window_bounds = array<i64: 1, 96>}, {pipeline_mode = #tpu.pipeline_mode<synchronous>, transform_indices = @transform_5, window_bounds = array<i64: 32, 32>}, {pipeline_mode = #tpu.pipeline_mode<synchronous>, transform_indices = @transform_6, window_bounds = array<i64: 32, 128>}, {pipeline_mode = #tpu.pipeline_mode<synchronous>, transform_indices = @transform_7, window_bounds = array<i64: 1, 128>}, {pipeline_mode = #tpu.pipeline_mode<synchronous>, transform_indices = @transform_8, window_bounds = array<i64: 128, 32>}, {pipeline_mode = #tpu.pipeline_mode<synchronous>, transform_indices = @transform_9, window_bounds = array<i64: 16, 32>}]} {
    %c0 = arith.constant 0 : index
    %c0_0 = arith.constant 0 : index
    %0 = vector.load %arg1[%c0, %c0_0] : memref<16x32xf32, #tpu.memory_space<vmem>>, vector<16x32xf32>
    %c0_1 = arith.constant 0 : index
    %c0_2 = arith.constant 0 : index
    %1 = vector.load %arg2[%c0_1, %c0_2] : memref<6x32xf32, #tpu.memory_space<vmem>>, vector<6x32xf32>
    %2 = vector.extract_strided_slice %1 {offsets = [0, 0], sizes = [1, 32], strides = [1, 1]} : vector<6x32xf32> to vector<1x32xf32>
    %3 = vector.extract_strided_slice %1 {offsets = [1, 0], sizes = [1, 32], strides = [1, 1]} : vector<6x32xf32> to vector<1x32xf32>
    %cst = arith.constant dense<0.000000e+00> : vector<16xf32>
    %4 = vector.multi_reduction <add>, %0, %cst [1] : vector<16x32xf32> to vector<16xf32>
    %5 = vector.shape_cast %4 : vector<16xf32> to vector<16x1xf32>
    %cst_3 = arith.constant 3.200000e+01 : f32
    %6 = vector.broadcast %cst_3 : f32 to vector<16x1xf32>
    %7 = arith.divf %5, %6 : vector<16x1xf32>
    %8 = vector.broadcast %7 : vector<16x1xf32> to vector<16x32xf32>
    %9 = arith.subf %0, %8 : vector<16x32xf32>
    %10 = arith.mulf %9, %9 : vector<16x32xf32>
    %cst_4 = arith.constant dense<0.000000e+00> : vector<16xf32>
    %11 = vector.multi_reduction <add>, %10, %cst_4 [1] : vector<16x32xf32> to vector<16xf32>
    %12 = vector.shape_cast %11 : vector<16xf32> to vector<16x1xf32>
    %cst_5 = arith.constant 3.200000e+01 : f32
    %13 = vector.broadcast %cst_5 : f32 to vector<16x1xf32>
    %14 = arith.divf %12, %13 : vector<16x1xf32>
    %15 = vector.broadcast %7 : vector<16x1xf32> to vector<16x32xf32>
    %16 = arith.subf %0, %15 : vector<16x32xf32>
    %cst_6 = arith.constant 9.99999974E-6 : f32
    %17 = vector.broadcast %cst_6 : f32 to vector<16x1xf32>
    %18 = arith.addf %14, %17 : vector<16x1xf32>
    %19 = math.sqrt %18 : vector<16x1xf32>
    %20 = vector.broadcast %19 : vector<16x1xf32> to vector<16x32xf32>
    %21 = arith.divf %16, %20 : vector<16x32xf32>
    %22 = vector.broadcast %2 : vector<1x32xf32> to vector<16x32xf32>
    %23 = arith.mulf %22, %21 : vector<16x32xf32>
    %24 = vector.broadcast %3 : vector<1x32xf32> to vector<16x32xf32>
    %25 = arith.addf %23, %24 : vector<16x32xf32>
    %c0_7 = arith.constant 0 : index
    %c0_8 = arith.constant 0 : index
    %26 = vector.load %arg4[%c0_7, %c0_8] : memref<32x96xf32, #tpu.memory_space<vmem>>, vector<32x96xf32>
    %cst_9 = arith.constant dense<0.000000e+00> : vector<16x96xf32>
    %27 = tpu.matmul %25, %26, %cst_9 {dimension_numbers = #tpu.dot_dimension_numbers<[1], [0], [0], [1], [0, 0, 1, 1], [], []>} : vector<16x32xf32>, vector<32x96xf32>, vector<16x96xf32> -> vector<16x96xf32>
    %c0_10 = arith.constant 0 : index
    %c0_11 = arith.constant 0 : index
    %28 = vector.load %arg5[%c0_10, %c0_11] : memref<1x96xf32, #tpu.memory_space<vmem>>, vector<1x96xf32>
    %29 = vector.broadcast %28 : vector<1x96xf32> to vector<16x96xf32>
    %30 = arith.addf %27, %29 : vector<16x96xf32>
    %31 = vector.extract_strided_slice %30 {offsets = [0, 0], sizes = [16, 8], strides = [1, 1]} : vector<16x96xf32> to vector<16x8xf32>
    %32 = vector.extract_strided_slice %30 {offsets = [0, 32], sizes = [16, 8], strides = [1, 1]} : vector<16x96xf32> to vector<16x8xf32>
    %cst_12 = arith.constant dense<0.000000e+00> : vector<16x16xf32>
    %33 = tpu.matmul %31, %32, %cst_12 {dimension_numbers = #tpu.dot_dimension_numbers<[1], [1], [0], [0], [0, 0, 1, 0], [], []>} : vector<16x8xf32>, vector<16x8xf32>, vector<16x16xf32> -> vector<16x16xf32>
    %34 = vector.extract_strided_slice %30 {offsets = [0, 8], sizes = [16, 8], strides = [1, 1]} : vector<16x96xf32> to vector<16x8xf32>
    %35 = vector.extract_strided_slice %30 {offsets = [0, 40], sizes = [16, 8], strides = [1, 1]} : vector<16x96xf32> to vector<16x8xf32>
    %cst_13 = arith.constant dense<0.000000e+00> : vector<16x16xf32>
    %36 = tpu.matmul %34, %35, %cst_13 {dimension_numbers = #tpu.dot_dimension_numbers<[1], [1], [0], [0], [0, 0, 1, 0], [], []>} : vector<16x8xf32>, vector<16x8xf32>, vector<16x16xf32> -> vector<16x16xf32>
    %37 = vector.extract_strided_slice %30 {offsets = [0, 16], sizes = [16, 8], strides = [1, 1]} : vector<16x96xf32> to vector<16x8xf32>
    %38 = vector.extract_strided_slice %30 {offsets = [0, 48], sizes = [16, 8], strides = [1, 1]} : vector<16x96xf32> to vector<16x8xf32>
    %cst_14 = arith.constant dense<0.000000e+00> : vector<16x16xf32>
    %39 = tpu.matmul %37, %38, %cst_14 {dimension_numbers = #tpu.dot_dimension_numbers<[1], [1], [0], [0], [0, 0, 1, 0], [], []>} : vector<16x8xf32>, vector<16x8xf32>, vector<16x16xf32> -> vector<16x16xf32>
    %40 = vector.extract_strided_slice %30 {offsets = [0, 24], sizes = [16, 8], strides = [1, 1]} : vector<16x96xf32> to vector<16x8xf32>
    %41 = vector.extract_strided_slice %30 {offsets = [0, 56], sizes = [16, 8], strides = [1, 1]} : vector<16x96xf32> to vector<16x8xf32>
    %cst_15 = arith.constant dense<0.000000e+00> : vector<16x16xf32>
    %42 = tpu.matmul %40, %41, %cst_15 {dimension_numbers = #tpu.dot_dimension_numbers<[1], [1], [0], [0], [0, 0, 1, 0], [], []>} : vector<16x8xf32>, vector<16x8xf32>, vector<16x16xf32> -> vector<16x16xf32>
    %43 = tpu.concatenate %33, %36, %39, %42 in 0 : vector<16x16xf32>, vector<16x16xf32>, vector<16x16xf32>, vector<16x16xf32> -> vector<64x16xf32>
    %c0_16 = arith.constant 0 : index
    %c0_17 = arith.constant 0 : index
    %44 = vector.load %arg3[%c0_16, %c0_17] : memref<64x16xf32, #tpu.memory_space<vmem>>, vector<64x16xf32>
    %45 = arith.addf %43, %44 : vector<64x16xf32>
    %cst_18 = arith.constant dense<0xFF800000> : vector<64xf32>
    %46 = vector.multi_reduction <maximumf>, %45, %cst_18 [1] : vector<64x16xf32> to vector<64xf32>
    %47 = vector.shape_cast %46 : vector<64xf32> to vector<64x1xf32>
    %48 = vector.broadcast %47 : vector<64x1xf32> to vector<64x16xf32>
    %49 = arith.subf %45, %48 : vector<64x16xf32>
    %50 = math.exp %49 : vector<64x16xf32>
    %cst_19 = arith.constant dense<0.000000e+00> : vector<64xf32>
    %51 = vector.multi_reduction <add>, %50, %cst_19 [1] : vector<64x16xf32> to vector<64xf32>
    %52 = vector.shape_cast %51 : vector<64xf32> to vector<64x1xf32>
    %53 = tpu.reciprocal %52 {approx = true} : vector<64x1xf32> -> vector<64x1xf32>
    %54 = vector.broadcast %53 : vector<64x1xf32> to vector<64x16xf32>
    %55 = arith.mulf %50, %54 : vector<64x16xf32>
    %56 = vector.extract_strided_slice %30 {offsets = [0, 64], sizes = [16, 8], strides = [1, 1]} : vector<16x96xf32> to vector<16x8xf32>
    %57 = vector.extract_strided_slice %55 {offsets = [0, 0], sizes = [16, 16], strides = [1, 1]} : vector<64x16xf32> to vector<16x16xf32>
    %cst_20 = arith.constant dense<0.000000e+00> : vector<16x8xf32>
    %58 = tpu.matmul %57, %56, %cst_20 {dimension_numbers = #tpu.dot_dimension_numbers<[1], [0], [0], [1], [0, 0, 1, 1], [], []>} : vector<16x16xf32>, vector<16x8xf32>, vector<16x8xf32> -> vector<16x8xf32>
    %59 = vector.extract_strided_slice %30 {offsets = [0, 72], sizes = [16, 8], strides = [1, 1]} : vector<16x96xf32> to vector<16x8xf32>
    %60 = vector.extract_strided_slice %55 {offsets = [16, 0], sizes = [16, 16], strides = [1, 1]} : vector<64x16xf32> to vector<16x16xf32>
    %cst_21 = arith.constant dense<0.000000e+00> : vector<16x8xf32>
    %61 = tpu.matmul %60, %59, %cst_21 {dimension_numbers = #tpu.dot_dimension_numbers<[1], [0], [0], [1], [0, 0, 1, 1], [], []>} : vector<16x16xf32>, vector<16x8xf32>, vector<16x8xf32> -> vector<16x8xf32>
    %62 = vector.extract_strided_slice %30 {offsets = [0, 80], sizes = [16, 8], strides = [1, 1]} : vector<16x96xf32> to vector<16x8xf32>
    %63 = vector.extract_strided_slice %55 {offsets = [32, 0], sizes = [16, 16], strides = [1, 1]} : vector<64x16xf32> to vector<16x16xf32>
    %cst_22 = arith.constant dense<0.000000e+00> : vector<16x8xf32>
    %64 = tpu.matmul %63, %62, %cst_22 {dimension_numbers = #tpu.dot_dimension_numbers<[1], [0], [0], [1], [0, 0, 1, 1], [], []>} : vector<16x16xf32>, vector<16x8xf32>, vector<16x8xf32> -> vector<16x8xf32>
    %65 = vector.extract_strided_slice %30 {offsets = [0, 88], sizes = [16, 8], strides = [1, 1]} : vector<16x96xf32> to vector<16x8xf32>
    %66 = vector.extract_strided_slice %55 {offsets = [48, 0], sizes = [16, 16], strides = [1, 1]} : vector<64x16xf32> to vector<16x16xf32>
    %cst_23 = arith.constant dense<0.000000e+00> : vector<16x8xf32>
    %67 = tpu.matmul %66, %65, %cst_23 {dimension_numbers = #tpu.dot_dimension_numbers<[1], [0], [0], [1], [0, 0, 1, 1], [], []>} : vector<16x16xf32>, vector<16x8xf32>, vector<16x8xf32> -> vector<16x8xf32>
    %68 = tpu.concatenate %58, %61, %64, %67 in 1 : vector<16x8xf32>, vector<16x8xf32>, vector<16x8xf32>, vector<16x8xf32> -> vector<16x32xf32>
    %c0_24 = arith.constant 0 : index
    %c0_25 = arith.constant 0 : index
    %69 = vector.load %arg6[%c0_24, %c0_25] : memref<32x32xf32, #tpu.memory_space<vmem>>, vector<32x32xf32>
    %cst_26 = arith.constant dense<0.000000e+00> : vector<16x32xf32>
    %70 = tpu.matmul %68, %69, %cst_26 {dimension_numbers = #tpu.dot_dimension_numbers<[1], [0], [0], [1], [0, 0, 1, 1], [], []>} : vector<16x32xf32>, vector<32x32xf32>, vector<16x32xf32> -> vector<16x32xf32>
    %71 = vector.extract_strided_slice %1 {offsets = [4, 0], sizes = [1, 32], strides = [1, 1]} : vector<6x32xf32> to vector<1x32xf32>
    %72 = vector.broadcast %71 : vector<1x32xf32> to vector<16x32xf32>
    %73 = arith.addf %70, %72 : vector<16x32xf32>
    %74 = arith.addf %73, %0 : vector<16x32xf32>
    %75 = vector.extract_strided_slice %1 {offsets = [2, 0], sizes = [1, 32], strides = [1, 1]} : vector<6x32xf32> to vector<1x32xf32>
    %76 = vector.extract_strided_slice %1 {offsets = [3, 0], sizes = [1, 32], strides = [1, 1]} : vector<6x32xf32> to vector<1x32xf32>
    %cst_27 = arith.constant dense<0.000000e+00> : vector<16xf32>
    %77 = vector.multi_reduction <add>, %74, %cst_27 [1] : vector<16x32xf32> to vector<16xf32>
    %78 = vector.shape_cast %77 : vector<16xf32> to vector<16x1xf32>
    %cst_28 = arith.constant 3.200000e+01 : f32
    %79 = vector.broadcast %cst_28 : f32 to vector<16x1xf32>
    %80 = arith.divf %78, %79 : vector<16x1xf32>
    %81 = vector.broadcast %80 : vector<16x1xf32> to vector<16x32xf32>
    %82 = arith.subf %74, %81 : vector<16x32xf32>
    %83 = arith.mulf %82, %82 : vector<16x32xf32>
    %cst_29 = arith.constant dense<0.000000e+00> : vector<16xf32>
    %84 = vector.multi_reduction <add>, %83, %cst_29 [1] : vector<16x32xf32> to vector<16xf32>
    %85 = vector.shape_cast %84 : vector<16xf32> to vector<16x1xf32>
    %cst_30 = arith.constant 3.200000e+01 : f32
    %86 = vector.broadcast %cst_30 : f32 to vector<16x1xf32>
    %87 = arith.divf %85, %86 : vector<16x1xf32>
    %88 = vector.broadcast %80 : vector<16x1xf32> to vector<16x32xf32>
    %89 = arith.subf %74, %88 : vector<16x32xf32>
    %cst_31 = arith.constant 9.99999974E-6 : f32
    %90 = vector.broadcast %cst_31 : f32 to vector<16x1xf32>
    %91 = arith.addf %87, %90 : vector<16x1xf32>
    %92 = math.sqrt %91 : vector<16x1xf32>
    %93 = vector.broadcast %92 : vector<16x1xf32> to vector<16x32xf32>
    %94 = arith.divf %89, %93 : vector<16x32xf32>
    %95 = vector.broadcast %75 : vector<1x32xf32> to vector<16x32xf32>
    %96 = arith.mulf %95, %94 : vector<16x32xf32>
    %97 = vector.broadcast %76 : vector<1x32xf32> to vector<16x32xf32>
    %98 = arith.addf %96, %97 : vector<16x32xf32>
    %c0_32 = arith.constant 0 : index
    %c0_33 = arith.constant 0 : index
    %99 = vector.load %arg7[%c0_32, %c0_33] : memref<32x128xf32, #tpu.memory_space<vmem>>, vector<32x128xf32>
    %cst_34 = arith.constant dense<0.000000e+00> : vector<16x128xf32>
    %100 = tpu.matmul %98, %99, %cst_34 {dimension_numbers = #tpu.dot_dimension_numbers<[1], [0], [0], [1], [0, 0, 1, 1], [], []>} : vector<16x32xf32>, vector<32x128xf32>, vector<16x128xf32> -> vector<16x128xf32>
    %c0_35 = arith.constant 0 : index
    %c0_36 = arith.constant 0 : index
    %101 = vector.load %arg8[%c0_35, %c0_36] : memref<1x128xf32, #tpu.memory_space<vmem>>, vector<1x128xf32>
    %102 = vector.broadcast %101 : vector<1x128xf32> to vector<16x128xf32>
    %103 = arith.addf %100, %102 : vector<16x128xf32>
    %cst_37 = arith.constant 0.636619746 : f32
    %104 = math.sqrt %cst_37 : f32
    %cst_38 = arith.constant 5.000000e-01 : f32
    %105 = vector.broadcast %cst_38 : f32 to vector<16x128xf32>
    %106 = arith.mulf %105, %103 : vector<16x128xf32>
    %107 = arith.mulf %103, %103 : vector<16x128xf32>
    %108 = arith.mulf %107, %103 : vector<16x128xf32>
    %cst_39 = arith.constant 4.471500e-02 : f32
    %109 = vector.broadcast %cst_39 : f32 to vector<16x128xf32>
    %110 = arith.mulf %109, %108 : vector<16x128xf32>
    %111 = arith.addf %103, %110 : vector<16x128xf32>
    %112 = vector.broadcast %104 : f32 to vector<16x128xf32>
    %113 = arith.mulf %112, %111 : vector<16x128xf32>
    %114 = math.tanh %113 : vector<16x128xf32>
    %cst_40 = arith.constant 1.000000e+00 : f32
    %115 = vector.broadcast %cst_40 : f32 to vector<16x128xf32>
    %116 = arith.addf %115, %114 : vector<16x128xf32>
    %117 = arith.mulf %106, %116 : vector<16x128xf32>
    %c0_41 = arith.constant 0 : index
    %c0_42 = arith.constant 0 : index
    %118 = vector.load %arg9[%c0_41, %c0_42] : memref<128x32xf32, #tpu.memory_space<vmem>>, vector<128x32xf32>
    %cst_43 = arith.constant dense<0.000000e+00> : vector<16x32xf32>
    %119 = tpu.matmul %117, %118, %cst_43 {dimension_numbers = #tpu.dot_dimension_numbers<[1], [0], [0], [1], [0, 0, 1, 1], [], []>} : vector<16x128xf32>, vector<128x32xf32>, vector<16x32xf32> -> vector<16x32xf32>
    %120 = vector.extract_strided_slice %1 {offsets = [5, 0], sizes = [1, 32], strides = [1, 1]} : vector<6x32xf32> to vector<1x32xf32>
    %121 = vector.broadcast %120 : vector<1x32xf32> to vector<16x32xf32>
    %122 = arith.addf %119, %121 : vector<16x32xf32>
    %123 = arith.addf %122, %74 : vector<16x32xf32>
    %c0_44 = arith.constant 0 : index
    %c0_45 = arith.constant 0 : index
    %124 = vector.load %arg10[%c0_44, %c0_45] : memref<16x32xf32, #tpu.memory_space<vmem>>, vector<16x32xf32>
    tpu.vector_store %arg10[%c0_44, %c0_45], %123 {strides = array<i32>} : memref<16x32xf32, #tpu.memory_space<vmem>>, vector<16x32xf32>,
    return
  }
  func.func @transform_0(%arg0: i32) -> (i32, i32) {
    %c0_i32 = arith.constant 0 : i32
    %c0_i32_0 = arith.constant 0 : i32
    %c0_i32_1 = arith.constant 0 : i32
    return %c0_i32, %c0_i32_0 : i32, i32
  }
  func.func @transform_1(%arg0: i32) -> (i32, i32) {
    %c0_i32 = arith.constant 0 : i32
    %c0_i32_0 = arith.constant 0 : i32
    %c0_i32_1 = arith.constant 0 : i32
    return %c0_i32, %c0_i32_0 : i32, i32
  }
  func.func @transform_2(%arg0: i32) -> (i32, i32) {
    %c0_i32 = arith.constant 0 : i32
    %c0_i32_0 = arith.constant 0 : i32
    %c0_i32_1 = arith.constant 0 : i32
    return %c0_i32, %c0_i32_0 : i32, i32
  }
  func.func @transform_3(%arg0: i32) -> (i32, i32) {
    %c0_i32 = arith.constant 0 : i32
    %c0_i32_0 = arith.constant 0 : i32
    %c0_i32_1 = arith.constant 0 : i32
    return %c0_i32, %c0_i32_0 : i32, i32
  }
  func.func @transform_4(%arg0: i32) -> (i32, i32) {
    %c0_i32 = arith.constant 0 : i32
    %c0_i32_0 = arith.constant 0 : i32
    %c0_i32_1 = arith.constant 0 : i32
    return %c0_i32, %c0_i32_0 : i32, i32
  }
  func.func @transform_5(%arg0: i32) -> (i32, i32) {
    %c0_i32 = arith.constant 0 : i32
    %c0_i32_0 = arith.constant 0 : i32
    %c0_i32_1 = arith.constant 0 : i32
    return %c0_i32, %c0_i32_0 : i32, i32
  }
  func.func @transform_6(%arg0: i32) -> (i32, i32) {
    %c0_i32 = arith.constant 0 : i32
    %c0_i32_0 = arith.constant 0 : i32
    %c0_i32_1 = arith.constant 0 : i32
    return %c0_i32, %c0_i32_0 : i32, i32
  }
  func.func @transform_7(%arg0: i32) -> (i32, i32) {
    %c0_i32 = arith.constant 0 : i32
    %c0_i32_0 = arith.constant 0 : i32
    %c0_i32_1 = arith.constant 0 : i32
    return %c0_i32, %c0_i32_0 : i32, i32
  }
  func.func @transform_8(%arg0: i32) -> (i32, i32) {
    %c0_i32 = arith.constant 0 : i32
    %c0_i32_0 = arith.constant 0 : i32
    %c0_i32_1 = arith.constant 0 : i32
    return %c0_i32, %c0_i32_0 : i32, i32
  }
  func.func @transform_9(%arg0: i32) -> (i32, i32) {
    %c0_i32 = arith.constant 0 : i32
    %c0_i32_0 = arith.constant 0 : i32
    %c0_i32_1 = arith.constant 0 : i32
    return %c0_i32, %c0_i32_0 : i32, i32
  }
}

</mosaic_0001>

<bundles_post_ra>
// kernel: tpu_custom_call.1
= control target key start
LH: loop header
LB: loop body
LE: loop exit
PB: predicated region body
PF: predicated region fallthrough
CT: control target
= control target key end

     0   :  { %vm36_vm0 = vcmask 261120   ;;  %s1341_s0 = inlined_call_operand.vmem [shape: f32[16,32], index: 0, kind: input, shape index: {}]   ;;  %s1342_s1 = inlined_call_operand.vmem [shape: f32[6,32], index: 1, kind: input, shape index: {}]   ;;  %s1343_s2 = inlined_call_operand.vmem [shape: f32[64,16], index: 2, kind: input, shape index: {}]   ;;  %s1344_s3 = inlined_call_operand.vmem [shape: f32[32,96], index: 3, kind: input, shape index: {}]   ;;  %s1345_s4 = inlined_call_operand.vmem [shape: f32[1,96], index: 4, kind: input, shape index: {}]   ;;  %s1346_s5 = inlined_call_operand.vmem [shape: f32[32,32], index: 5, kind: input, shape index: {}]   ;;  %s1347_s6 = inlined_call_operand.vmem [shape: f32[32,128], index: 6, kind: input, shape index: {}]   ;;  %s1348_s7 = inlined_call_operand.vmem [shape: f32[1,128], index: 7, kind: input, shape index: {}]   ;;  %s1349_s8 = inlined_call_operand.vmem [shape: f32[128,32], index: 8, kind: input, shape index: {}]   ;;  %s1350_s9 = inlined_call_operand.hbm [shape: f32[16,32], index: 9, kind: output, shape index: {}]  }
   0x1   :  { %v1050_v0 = vld [vmem:[%s1341_s0] sm:$0xff] }
   0x2   :  { %v37_v1 = vsel %vm36_vm0, %v1050_v0, 0.0 }
   0x3   :  { %14 = vsyncpa [#allocation3], 0  ;;  %38 = vadd.xlane.f32.xlu0 %v37_v1  ;;  %v1057_v2 = vld [vmem:[%s1341_s0 + $0x8] sm:$0xff]  ;;  %v980_v4 = vmov 32.0   ;;  %v129_v21 = vld [vmem:[%s1344_s3 + $0x18] sm:$0xff]  ;;  %s981_s22 = smov 88  }
   0x4   :  { %v40_v3 = vsel %vm36_vm0, %v1057_v2, 0.0  ;;  %900 = vrcp.f32 %v980_v4  ;;  %v128_v22 = vld [vmem:[%s1344_s3 + $0x10] sm:$0xff]  ;;  %152 = vmatpush.msra.mxu0 %v129_v21  ;;  %v127_v23 = vld [vmem:[%s1344_s3 + $0x8] sm:$0xff]  ;;  %v126_v24 = vld [vmem:[%s1344_s3] sm:$0xff]  ;;  %s982_s23 = smov 120   ;;  %s983_s24 = smov 80  }
   0x5   :  { %v1094_v57 = vld [vmem:[%s1342_s1] sm:$0x3f]  ;;  %s984_s25 = smov 72   ;;  %s986_s26 = smov 96   ;;  %vm169_vm14 = vcmask 64512   ;;  %vm334_vm15 = vcmask 130048  }
   0x6   :  { %153 = vmatpush.msra.mxu0 %v128_v22  ;;  %v120_v62 = vperm.slane %v1094_v57, 0  ;;  %v123_v4 = vperm.slane %v1094_v57, 1  ;;  %s987_s27 = smov 104   ;;  %s989_s1 = smov 48  }
   0x7   :  { %s990_s21 = smov 40  }
   0x8   :  { %154 = vmatpush.msra.mxu0 %v127_v23 }
   0xa   :  { %v901_v5 = vpop.eup %900  ;;  %155 = vmatpush.msra.mxu0 %v126_v24 }
   0xb   :  { %41 = vadd.xlane.f32.xlu0 %v40_v3  ;;  %v44_v6 = vmul.f32 32.0, %v901_v5  ;;  %vm48_vm1 = vweird.f32 %v901_v5 }
   0xd   :  { %v45_v7 = vsub.f32 1.0, %v44_v6 }
   0xf   :  { %v46_v8 = vmul.f32 %v901_v5, %v45_v7 }
  0x11   :  { %v47_v9 = vadd.f32 %v901_v5, %v46_v8 }
  0x13   :  { %v1061_v10 = vsel %vm48_vm1, %v901_v5, %v47_v9  ;;  %vm591_vm1 = vcmask 195584  }
  0x76   :  { %v39_v11 = vpop.xlane.xlu0 %38 }
  0x77   :  { %v50_v12 = vmul.f32 %v1061_v10, %v39_v11 }
  0x79   :  { %v1065_v13 = vsub.f32 %v1050_v0, %v50_v12 }
  0x7b   :  { %v54_v14 = vmul.f32 %v1065_v13, %v1065_v13 }
  0x7d   :  { %v56_v15 = vsel %vm36_vm0, %v54_v14, 0.0 }
  0x7e   :  { %57 = vadd.xlane.f32.xlu1 %v56_v15  ;;  %v42_v16 = vpop.xlane.xlu0 %41 }
  0x7f   :  { %v51_v17 = vmul.f32 %v1061_v10, %v42_v16 }
  0x81   :  { %v1072_v18 = vsub.f32 %v1057_v2, %v51_v17 }
  0x83   :  { %v55_v19 = vmul.f32 %v1072_v18, %v1072_v18 }
  0x85   :  { %v59_v20 = vsel %vm36_vm0, %v55_v19, 0.0 }
  0x86   :  { %60 = vadd.xlane.f32.xlu1 %v59_v20  ;;  %v898_v20 = vld [vmem:[%s1345_s4] ss:$0 sm:$0xff]  ;;  %s985_s4 = smov 112  }
  0xf1   :  { %v58_v25 = vpop.xlane.xlu1 %57 }
  0xf2   :  { %v62_v26 = vmul.f32 %v58_v25, %v1061_v10 }
  0xf4   :  { %v64_v27 = vadd.f32 1e-05, %v62_v26 }
  0xf6   :  { %902 = vrsqrt.f32 %v64_v27  ;;  %vm73_vm2 = vcmp.eq.f32.partialorder %v64_v27, inf  ;;  %v76_v41 = vand.u32 2147483648, %v64_v27  ;;  %vm75_vm3 = vcmp.eq.f32.partialorder %v64_v27, 0.0 }
  0xf9   :  { %v61_v28 = vpop.xlane.xlu1 %60 }
  0xfa   :  { %v63_v29 = vmul.f32 %v61_v28, %v1061_v10 }
  0xfc   :  { %v903_v30 = vpop.eup %902  ;;  %v65_v31 = vadd.f32 1e-05, %v63_v29 }
  0xfd   :  { %v67_v32 = vmul.f32 %v903_v30, %v64_v27 }
  0xfe   :  { %904 = vrsqrt.f32 %v65_v31  ;;  %vm85_vm4 = vcmp.eq.f32.partialorder %v65_v31, inf  ;;  %v88_v48 = vand.u32 2147483648, %v65_v31  ;;  %vm87_vm5 = vcmp.eq.f32.partialorder %v65_v31, 0.0 }
  0xff   :  { %v68_v33 = vmul.f32 %v903_v30, %v67_v32 }
 0x101   :  { %v69_v34 = vmul.f32 0.5, %v68_v33 }
 0x103   :  { %v70_v35 = vsub.f32 1.5, %v69_v34 }
 0x104   :  { %v905_v36 = vpop.eup %904 }
 0x105   :  { %v79_v37 = vmul.f32 %v905_v36, %v65_v31  ;;  %v71_v38 = vmul.f32 %v903_v30, %v70_v35 }
 0x107   :  { %v80_v39 = vmul.f32 %v905_v36, %v79_v37  ;;  %v72_v40 = vmul.f32 %v71_v38, %v64_v27  ;;  %v322_v38 = vld [vmem:[%s1343_s2 + $0x20] sm:$0xff] }
 0x109   :  { %v81_v42 = vmul.f32 0.5, %v80_v39  ;;  %v74_v43 = vsel %vm73_vm2, %v64_v27, %v72_v40 }
 0x10a   :  { %v77_v44 = vsel %vm75_vm3, %v76_v41, %v74_v43 }
 0x10b   :  { %v82_v45 = vsub.f32 1.5, %v81_v42  ;;  %906 = vrcp.f32 %v77_v44  ;;  %v101_v54 = vand.u32 2147483648, %v77_v44  ;;  %v99_v56 = vand.u32 2147483647, %v77_v44  ;;  %v323_v42 = vld [vmem:[%s1343_s2 + $0x28] sm:$0xff] }
 0x10c   :  { %vm95_vm7 = vweird.f32 %v77_v44 }
 0x10d   :  { %v83_v46 = vmul.f32 %v905_v36, %v82_v45  ;;  %v102_v60 = vor.u32 1.1754944e-38, %v101_v54  ;;  %vm100_vm9 = vcmp.eq.f32.partialorder %v99_v56, 8.507059e+37 }
 0x10f   :  { %v84_v47 = vmul.f32 %v83_v46, %v65_v31  ;;  %v318_v46 = vld [vmem:[%s1343_s2] sm:$0xff] }
 0x111   :  { %v907_v49 = vpop.eup %906  ;;  %v86_v50 = vsel %vm85_vm4, %v65_v31, %v84_v47 }
 0x112   :  { %v91_v51 = vmul.f32 %v907_v49, %v77_v44  ;;  %v89_v52 = vsel %vm87_vm5, %v88_v48, %v86_v50  ;;  %vm96_vm6 = vweird.f32 %v907_v49 }
 0x113   :  { %908 = vrcp.f32 %v89_v52  ;;  %vm97_vm8 = vmor %vm95_vm7, %vm96_vm6  ;;  %v116_v6 = vand.u32 2147483648, %v89_v52  ;;  %v114_v9 = vand.u32 2147483647, %v89_v52  ;;  %vm110_vm11 = vweird.f32 %v89_v52 }
 0x114   :  { %v92_v53 = vsub.f32 1.0, %v91_v51  ;;  %v320_v51 = vld [vmem:[%s1343_s2 + $0x10] sm:$0xff] }
 0x115   :  { %v117_v14 = vor.u32 1.1754944e-38, %v116_v6  ;;  %vm115_vm13 = vcmp.eq.f32.partialorder %v114_v9, 8.507059e+37  ;;  %v325_v6 = vld [vmem:[%s1343_s2 + $0x38] sm:$0xff] }
 0x116   :  { %v93_v55 = vmul.f32 %v907_v49, %v92_v53 }
 0x118   :  { %v94_v58 = vadd.f32 %v907_v49, %v93_v55 }
 0x119   :  { %v909_v59 = vpop.eup %908 }
 0x11a   :  { %v98_v61 = vsel %vm97_vm8, %v907_v49, %v94_v58  ;;  %v106_v63 = vmul.f32 %v909_v59, %v89_v52  ;;  %vm111_vm10 = vweird.f32 %v909_v59  ;;  %v319_v52 = vld [vmem:[%s1343_s2 + $0x8] sm:$0xff] }
 0x11b   :  { %v103_v1 = vsel %vm100_vm9, %v102_v60, %v98_v61  ;;  %vm112_vm12 = vmor %vm110_vm11, %vm111_vm10  ;;  %v321_v61 = vld [vmem:[%s1343_s2 + $0x18] sm:$0xff] }
 0x11c   :  { %v104_v3 = vmul.f32 %v103_v1, %v1065_v13  ;;  %v107_v5 = vsub.f32 1.0, %v106_v63 }
 0x11e   :  { %v121_v7 = vmul.f32 %v120_v62, %v104_v3  ;;  %v108_v8 = vmul.f32 %v909_v59, %v107_v5 }
 0x120   :  { %v124_v11 = vadd.f32 %v123_v4, %v121_v7  ;;  %v109_v12 = vadd.f32 %v909_v59, %v108_v8 }
 0x122   :  { %829 = vmatmul.msk.f32.vlgmr.msra.gmra.mxu0 %vm36_vm0, %v124_v11  ;;  %v113_v15 = vsel %vm112_vm12, %v909_v59, %v109_v12 }
 0x123   :  { %v118_v16 = vsel %vm115_vm13, %v117_v14, %v113_v15 }
 0x124   :  { %v119_v13 = vmul.f32 %v118_v16, %v1072_v18 }
 0x126   :  { %v122_v17 = vmul.f32 %v120_v62, %v119_v13  ;;  %v324_v62 = vld [vmem:[%s1343_s2 + $0x30] sm:$0xff]  ;;  %s988_s2 = smov 56  }
 0x128   :  { %v125_v19 = vadd.f32 %v123_v4, %v122_v17 }
 0x12a   :  { %830 = vmatmul.msk.f32.gmra.mxu0 %vm36_vm0, %v125_v19 }
 0x19f   :  { %v157_v21 = vpop.f32.mrf.mxu0 }
 0x1a0   :  { %v1105_v22 = vadd.f32 %v898_v20, %v157_v21 }
 0x1a2   :  { %205 = vrot.lane.b32.xlu2 %v1105_v22, %s981_s22  ;;  %201 = vrot.lane.b32.xlu1 %v1105_v22, %s982_s23 }
 0x1a7   :  { %v160_v23 = vpop.f32.mrf.mxu0 }
 0x1a8   :  { %v1109_v24 = vadd.f32 %v898_v20, %v160_v23 }
 0x1aa   :  { %244 = vrot.lane.b32.xlu2 %v1105_v22, %s983_s24  ;;  %283 = vrot.lane.b32.xlu1 %v1105_v22, %s984_s25 }
 0x1ab   :  { %246 = vrot.lane.b32.xlu0 %v1109_v24, %s983_s24  ;;  %s993_s24 = smov 16  }
 0x1b2   :  { %240 = vrot.lane.b32.xlu2 %v1105_v22, %s985_s4  ;;  %167 = vrot.lane.b32.xlu1 %v1109_v24, %s986_s26 }
 0x1b3   :  { %203 = vrot.lane.b32.xlu0 %v1109_v24, %s982_s23  ;;  %s992_s23 = smov 8  }
 0x1ba   :  { %207 = vrot.lane.b32.xlu2 %v1109_v24, %s981_s22  ;;  %s991_s22 = smov 64  }
 0x1bb   :  { %279 = vrot.lane.b32.xlu0 %v1105_v22, %s987_s27 }
 0x1c2   :  { %285 = vrot.lane.b32.xlu2 %v1109_v24, %s984_s25  ;;  %s994_s25 = smov 24  }
 0x1c3   :  { %165 = vrot.lane.b32.xlu0 %v1105_v22, %s986_s26 }
 0x1ca   :  { %242 = vrot.lane.b32.xlu2 %v1109_v24, %s985_s4 }
 0x1d2   :  { %281 = vrot.lane.b32.xlu2 %v1109_v24, %s987_s27 }
 0x1fc   :  { %v206_v18 = vpop.permute.xlu2 %205 }
 0x204   :  { %v245_v25 = vpop.permute.xlu2 %244 }
 0x20c   :  { %v241_v26 = vpop.permute.xlu2 %240 }
 0x214   :  { %v208_v27 = vpop.permute.xlu2 %207  ;;  %v202_v28 = vpop.permute.xlu1 %201 }
 0x215   :  { %835 = vmatpush.xpose.msk.msra.mxu2 %vm169_vm14, %v208_v27 }
 0x219   :  { %836 = vmatpush.xpose.msk.msra.mxu2 %vm169_vm14, %v206_v18 }
 0x21c   :  { %v286_v29 = vpop.permute.xlu2 %285  ;;  %837 = vmatmul.msk.f32.vlgmr.msra.gmra.mxu2 %vm169_vm14, %v202_v28  ;;  %v284_v30 = vpop.permute.xlu1 %283 }
 0x21d   :  { %v247_v31 = vpop.permute.xlu0 %246 }
 0x21e   :  { %839 = vmatpush.xpose.msk.msrb.mxu0 %vm169_vm14, %v247_v31  ;;  %859 = vmatpush.xpose.msk.msra.mxu3 %vm169_vm14, %v247_v31 }
 0x222   :  { %840 = vmatpush.xpose.msk.msrb.mxu0 %vm169_vm14, %v245_v25  ;;  %860 = vmatpush.xpose.msk.msra.mxu3 %vm169_vm14, %v245_v25 }
 0x224   :  { %v243_v32 = vpop.permute.xlu2 %242  ;;  %v168_v33 = vpop.permute.xlu1 %167 }
 0x225   :  { %841 = vmatmul.msk.f32.vlgmr.msrb.gmra.mxu0 %vm169_vm14, %v241_v26  ;;  %v204_v34 = vpop.permute.xlu0 %203  ;;  %831 = vmatpush.xpose.msk.msra.mxu1 %vm169_vm14, %v168_v33 }
 0x226   :  { %843 = vmatpush.xpose.msk.msra.mxu0 %vm169_vm14, %v286_v29  ;;  %838 = vmatmul.msk.f32.gmra.mxu2 %vm169_vm14, %v204_v34 }
 0x227   :  { %842 = vmatmul.msk.f32.vlgmr.msra.gmra.mxu3 %vm169_vm14, %v243_v32 }
 0x22a   :  { %844 = vmatpush.xpose.msk.msra.mxu0 %vm169_vm14, %v284_v30 }
 0x22c   :  { %v282_v36 = vpop.permute.xlu2 %281 }
 0x22d   :  { %v280_v35 = vpop.permute.xlu0 %279 }
 0x22e   :  { %845 = vmatmul.msk.f32.vlgmr.msra.gmra.mxu0 %vm169_vm14, %v280_v35 }
 0x235   :  { %v166_v37 = vpop.permute.xlu0 %165 }
 0x236   :  { %832 = vmatpush.xpose.msk.msra.mxu1 %vm169_vm14, %v166_v37  ;;  %846 = vmatmul.msk.f32.gmra.mxu0 %vm169_vm14, %v282_v36 }
 0x239   :  { %833 = vmatmul.msk.f32.vlgmr.msra.gmra.mxu1 %vm169_vm14, %v1105_v22 }
 0x241   :  { %834 = vmatmul.msk.f32.gmra.mxu1 %vm169_vm14, %v1109_v24 }
 0x29f   :  { %v234_v49 = vpop.f32.mrf.mxu2 }
 0x2a0   :  { %v328_v53 = vadd.f32 %v320_v51, %v234_v49 }
 0x2a2   :  { %v273_v39 = vpop.f32.mrf.mxu0  ;;  %v341_v58 = vsel %vm334_vm15, %v328_v53, -inf }
 0x2a3   :  { %v330_v40 = vadd.f32 %v322_v38, %v273_v39  ;;  %v878_v39 = vpack.i.bf16 %v1105_v22, %v1109_v24 }
 0x2a5   :  { %v347_v41 = vsel %vm334_vm15, %v330_v40, -inf }
 0x2a6   :  { %348 = vmax.xlane.f32.xlu1 %v347_v41 }
 0x2a9   :  { %v237_v60 = vpop.f32.mrf.mxu2 }
 0x2aa   :  { %v276_v43 = vpop.f32.mrf.mxu3  ;;  %v329_v63 = vadd.f32 %v321_v61, %v237_v60 }
 0x2ab   :  { %v331_v44 = vadd.f32 %v323_v42, %v276_v43  ;;  %v312_v56 = vpop.f32.mrf.mxu0 }
 0x2ac   :  { %v332_v1 = vadd.f32 %v324_v62, %v312_v56  ;;  %v344_v4 = vsel %vm334_vm15, %v329_v63, -inf }
 0x2ad   :  { %v350_v45 = vsel %vm334_vm15, %v331_v44, -inf }
 0x2ae   :  { %351 = vmax.xlane.f32.xlu1 %v350_v45  ;;  %v353_v3 = vsel %vm334_vm15, %v332_v1, -inf }
 0x2b3   :  { %v315_v5 = vpop.f32.mrf.mxu0 }
 0x2b4   :  { %v333_v7 = vadd.f32 %v325_v6, %v315_v5 }
 0x2b6   :  { %v195_v47 = vpop.f32.mrf.mxu1  ;;  %v356_v8 = vsel %vm334_vm15, %v333_v7, -inf }
 0x2b7   :  { %v1154_v48 = vadd.f32 %v318_v46, %v195_v47 }
 0x2b9   :  { %v335_v50 = vsel %vm334_vm15, %v1154_v48, -inf }
 0x2ba   :  { %336 = vmax.xlane.f32.xlu2 %v335_v50 }
 0x2be   :  { %v198_v54 = vpop.f32.mrf.mxu1 }
 0x2bf   :  { %v1164_v55 = vadd.f32 %v319_v52, %v198_v54 }
 0x2c1   :  { %v338_v59 = vsel %vm334_vm15, %v1164_v55, -inf }
 0x2c2   :  { %342 = vmax.xlane.f32.xlu2 %v341_v58  ;;  %339 = vmax.xlane.f32.xlu0 %v338_v59 }
 0x2ca   :  { %354 = vmax.xlane.f32.xlu2 %v353_v3  ;;  %345 = vmax.xlane.f32.xlu0 %v344_v4 }
 0x2d2   :  { %357 = vmax.xlane.f32.xlu0 %v356_v8 }
 0x319   :  { %v349_v9 = vpop.xlane.xlu1 %348 }
 0x31a   :  { %v363_v11 = vsub.f32 %v330_v40, %v349_v9 }
 0x31c   :  { %v375_v12 = vmul.f32 1.442695, %v363_v11 }
 0x31e   :  { %910 = vpow2.f32 %v375_v12 }
 0x321   :  { %v352_v21 = vpop.xlane.xlu1 %351 }
 0x322   :  { %v364_v28 = vsub.f32 %v331_v44, %v352_v21 }
 0x324   :  { %v1181_v14 = vpop.eup %910  ;;  %v377_v32 = vmul.f32 1.442695, %v364_v28 }
 0x325   :  { %v395_v15 = vsel %vm334_vm15, %v1181_v14, 0.0 }
 0x326   :  { %396 = vadd.xlane.f32.xlu2 %v395_v15 }
 0x32d   :  { %v337_v16 = vpop.xlane.xlu2 %336 }
 0x32e   :  { %v359_v42 = vsub.f32 %v1154_v48, %v337_v16 }
 0x330   :  { %v367_v44 = vmul.f32 1.442695, %v359_v42 }
 0x335   :  { %v343_v13 = vpop.xlane.xlu2 %342  ;;  %v340_v17 = vpop.xlane.xlu0 %339 }
 0x336   :  { %v361_v19 = vsub.f32 %v328_v53, %v343_v13  ;;  %v360_v47 = vsub.f32 %v1164_v55, %v340_v17 }
 0x338   :  { %v371_v20 = vmul.f32 1.442695, %v361_v19  ;;  %v369_v49 = vmul.f32 1.442695, %v360_v47 }
 0x33a   :  { %912 = vpow2.f32 %v371_v20 }
 0x33d   :  { %v355_v23 = vpop.xlane.xlu2 %354  ;;  %v346_v18 = vpop.xlane.xlu0 %345 }
 0x33e   :  { %v365_v25 = vsub.f32 %v332_v1, %v355_v23  ;;  %v362_v26 = vsub.f32 %v329_v63, %v346_v18 }
 0x340   :  { %v1185_v27 = vpop.eup %912  ;;  %v379_v29 = vmul.f32 1.442695, %v365_v25  ;;  %v373_v30 = vmul.f32 1.442695, %v362_v26 }
 0x341   :  { %v389_v31 = vsel %vm334_vm15, %v1185_v27, 0.0 }
 0x342   :  { %914 = vpow2.f32 %v379_v29  ;;  %390 = vadd.xlane.f32.xlu1 %v389_v31 }
 0x343   :  { %916 = vpow2.f32 %v373_v30 }
 0x344   :  { %918 = vpow2.f32 %v377_v32 }
 0x345   :  { %v358_v40 = vpop.xlane.xlu0 %357 }
 0x346   :  { %v366_v41 = vsub.f32 %v333_v7, %v358_v40 }
 0x348   :  { %v915_v33 = vpop.eup %914  ;;  %v381_v43 = vmul.f32 1.442695, %v366_v41 }
 0x349   :  { %v1189_v34 = vpop.eup %916  ;;  %v401_v35 = vsel %vm334_vm15, %v915_v33, 0.0 }
 0x34a   :  { %v392_v36 = vsel %vm334_vm15, %v1189_v34, 0.0  ;;  %402 = vadd.xlane.f32.xlu2 %v401_v35  ;;  %v1194_v37 = vpop.eup %918  ;;  %920 = vpow2.f32 %v381_v43  ;;  %v597_v35 = vld [vmem:[%s1346_s5 + $0x18] sm:$0xff] }
 0x34b   :  { %393 = vadd.xlane.f32.xlu0 %v392_v36  ;;  %v398_v38 = vsel %vm334_vm15, %v1194_v37, 0.0  ;;  %922 = vpow2.f32 %v367_v44  ;;  %v596_v36 = vld [vmem:[%s1346_s5 + $0x10] sm:$0xff] }
 0x34c   :  { %924 = vpow2.f32 %v369_v49 }
 0x350   :  { %v921_v45 = vpop.eup %920 }
 0x351   :  { %v404_v46 = vsel %vm334_vm15, %v921_v45, 0.0  ;;  %v1202_v22 = vpop.eup %922 }
 0x352   :  { %399 = vadd.xlane.f32.xlu2 %v398_v38  ;;  %v383_v24 = vsel %vm334_vm15, %v1202_v22, 0.0  ;;  %v925_v50 = vpop.eup %924  ;;  %v594_v38 = vld [vmem:[%s1346_s5] sm:$0xff] }
 0x353   :  { %v386_v48 = vsel %vm334_vm15, %v925_v50, 0.0 }
 0x35b   :  { %879 = vrot.lane.b32.xlu1 %v878_v39, %s988_s2 }
 0x35f   :  { %884 = vrot.lane.b32.xlu0 %v878_v39, %s989_s1 }
 0x36a   :  { %889 = vrot.lane.b32.xlu2 %v878_v39, %s990_s21 }
 0x372   :  { %894 = vrot.lane.b32.xlu2 %v878_v39, %s991_s22 }
 0x385   :  { %405 = vadd.xlane.f32.xlu1 %v404_v46 }
 0x389   :  { %384 = vadd.xlane.f32.xlu0 %v383_v24 }
 0x399   :  { %v397_v51 = vpop.xlane.xlu2 %396 }
 0x39b   :  { %387 = vadd.xlane.f32.xlu2 %v386_v48 }
 0x3b5   :  { %v391_v53 = vpop.xlane.xlu1 %390 }
 0x3b6   :  { %926 = vrcp.f32 %v391_v53 }
 0x3bc   :  { %v927_v58 = vpop.eup %926 }
 0x3bd   :  { %v403_v52 = vpop.xlane.xlu2 %402  ;;  %v417_v5 = vmul.f32 %v927_v58, %v1185_v27 }
 0x3be   :  { %928 = vrcp.f32 %v403_v52  ;;  %v394_v56 = vpop.xlane.xlu0 %393 }
 0x3bf   :  { %930 = vrcp.f32 %v397_v51  ;;  %v598_v51 = vperm.slane %v1094_v57, 4 }
 0x3c0   :  { %932 = vrcp.f32 %v394_v56 }
 0x3c4   :  { %v929_v61 = vpop.eup %928 }
 0x3c5   :  { %v400_v54 = vpop.xlane.xlu2 %399  ;;  %v421_v3 = vmul.f32 %v929_v61, %v915_v33  ;;  %v931_v6 = vpop.eup %930 }
 0x3c6   :  { %934 = vrcp.f32 %v400_v54  ;;  %v419_v11 = vmul.f32 %v931_v6, %v1181_v14  ;;  %v933_v12 = vpop.eup %932 }
 0x3c7   :  { %v418_v13 = vmul.f32 %v933_v12, %v1189_v34 }
 0x3cc   :  { %v935_v17 = vpop.eup %934 }
 0x3cd   :  { %v890_v59 = vpop.permute.xlu2 %889  ;;  %v880_v60 = vpop.permute.xlu1 %879  ;;  %v420_v19 = vmul.f32 %v935_v17, %v1194_v37  ;;  %v595_v37 = vld [vmem:[%s1346_s5 + $0x8] sm:$0xff] }
 0x3ce   :  { %v891_v55 = vunpack.i.l.bf16 %v890_v59  ;;  %v881_v62 = vunpack.i.l.bf16 %v880_v60  ;;  %v892_v63 = vunpack.i.h.bf16 %v890_v59  ;;  %v882_v1 = vunpack.i.h.bf16 %v880_v60  ;;  %v713_v17 = vld [vmem:[%s1347_s6 + $0x8] sm:$0xff] }
 0x3d0   :  { %484 = vmatpush.msrb.mxu2 %v881_v62  ;;  %554 = vmatpush.msrb.mxu0 %v891_v55 }
 0x3d1   :  { %v885_v4 = vpop.permute.xlu0 %884 }
 0x3d2   :  { %485 = vmatpush.msrb.mxu2 %v882_v1  ;;  %555 = vmatpush.msrb.mxu0 %v892_v63  ;;  %v886_v7 = vunpack.i.l.bf16 %v885_v4  ;;  %v887_v8 = vunpack.i.h.bf16 %v885_v4 }
 0x3d3   :  { %849 = vmatmul.msk.f32.vlgmr.msrb.gmra.mxu2 %vm334_vm15, %v417_v5  ;;  %853 = vmatmul.msk.f32.vlgmr.msrb.gmra.mxu0 %vm334_vm15, %v421_v3 }
 0x3d4   :  { %519 = vmatpush.msrb.mxu3 %v886_v7 }
 0x3d5   :  { %v895_v9 = vpop.permute.xlu2 %894 }
 0x3d6   :  { %520 = vmatpush.msrb.mxu3 %v887_v8  ;;  %v896_v15 = vunpack.i.l.bf16 %v895_v9  ;;  %v897_v16 = vunpack.i.h.bf16 %v895_v9 }
 0x3d7   :  { %851 = vmatmul.msk.f32.vlgmr.msrb.gmra.mxu3 %vm334_vm15, %v419_v11  ;;  %v715_v11 = vld [vmem:[%s1347_s6 + $0x18] sm:$0xff] }
 0x3d8   :  { %449 = vmatpush.msrb.mxu1 %v896_v15  ;;  %738 = vmatpush.msra.mxu2 %v715_v11  ;;  %v777_v11 = vld [vmem:[%s1349_s8 + $0x50] sm:$0xff] }
 0x3da   :  { %450 = vmatpush.msrb.mxu1 %v897_v16  ;;  %v714_v16 = vld [vmem:[%s1347_s6 + $0x10] sm:$0xff] }
 0x3db   :  { %850 = vmatmul.msk.f32.gmra.mxu2 %vm334_vm15, %v418_v13 }
 0x3dc   :  { %617 = vmatpush.msra.mxu1 %v597_v35  ;;  %739 = vmatpush.msra.mxu2 %v714_v16  ;;  %v773_v16 = vld [vmem:[%s1349_s8 + $0x30] sm:$0xff] }
 0x3de   :  { %618 = vmatpush.msra.mxu1 %v596_v36  ;;  %740 = vmatpush.msra.mxu2 %v713_v17  ;;  %v771_v17 = vld [vmem:[%s1349_s8 + $0x20] sm:$0xff] }
 0x3df   :  { %852 = vmatmul.msk.f32.gmra.mxu3 %vm334_vm15, %v420_v19 }
 0x3e0   :  { %619 = vmatpush.msra.mxu1 %v595_v37 }
 0x3e2   :  { %620 = vmatpush.msra.mxu1 %v594_v38 }
 0x3f8   :  { %v406_v20 = vpop.xlane.xlu1 %405 }
 0x3f9   :  { %936 = vrcp.f32 %v406_v20  ;;  %v712_v20 = vld [vmem:[%s1347_s6] sm:$0xff] }
 0x3fa   :  { %741 = vmatpush.msra.mxu2 %v712_v20  ;;  %v769_v20 = vld [vmem:[%s1349_s8 + $0x10] sm:$0xff] }
 0x3fc   :  { %v385_v14 = vpop.xlane.xlu0 %384 }
 0x3fd   :  { %938 = vrcp.f32 %v385_v14 }
 0x3ff   :  { %v937_v21 = vpop.eup %936 }
 0x400   :  { %v422_v23 = vmul.f32 %v937_v21, %v921_v45 }
 0x402   :  { %854 = vmatmul.msk.f32.gmra.mxu0 %vm334_vm15, %v422_v23 }
 0x403   :  { %v939_v18 = vpop.eup %938 }
 0x404   :  { %v415_v25 = vmul.f32 %v939_v18, %v1202_v22 }
 0x406   :  { %847 = vmatmul.msk.f32.vlgmr.msrb.gmra.mxu1 %vm334_vm15, %v415_v25 }
 0x40e   :  { %v388_v26 = vpop.xlane.xlu2 %387 }
 0x40f   :  { %940 = vrcp.f32 %v388_v26 }
 0x415   :  { %v941_v27 = vpop.eup %940 }
 0x416   :  { %v416_v28 = vmul.f32 %v941_v27, %v925_v50 }
 0x418   :  { %848 = vmatmul.msk.f32.gmra.mxu1 %vm334_vm15, %v416_v28 }
 0x450   :  { %v557_v31 = vpop.f32.mrf.mxu0 }
 0x456   :  { %v487_v29 = vpop.f32.mrf.mxu2 }
 0x457   :  { %565 = vrot.lane.b32.xlu1 %v487_v29, %s992_s23 }
 0x45a   :  { %v522_v30 = vpop.f32.mrf.mxu3 }
 0x45b   :  { %573 = vrot.lane.b32.xlu0 %v522_v30, %s993_s24 }
 0x45e   :  { %v490_v32 = vpop.f32.mrf.mxu2 }
 0x45f   :  { %581 = vrot.lane.b32.xlu1 %v557_v31, %s994_s25 }
 0x462   :  { %v525_v33 = vpop.f32.mrf.mxu3 }
 0x463   :  { %575 = vrot.lane.b32.xlu2 %v525_v33, %s993_s24  ;;  %567 = vrot.lane.b32.xlu0 %v490_v32, %s992_s23  ;;  %s817_s24 = sshll.u32 %s1350_s9, 4  ;;  %s818_s24 = int_to_ptr.hbm [resolvable:$true] %s817_s24 }
 0x47f   :  { %v560_v34 = vpop.f32.mrf.mxu0 }
 0x480   :  { %583 = vrot.lane.b32.xlu1 %v560_v34, %s994_s25  ;;  %s996_s25 = smov 128  }
 0x483   :  { %v452_v41 = vpop.f32.mrf.mxu1 }
 0x495   :  { %v455_v22 = vpop.f32.mrf.mxu1 }
 0x4bd   :  { %v576_v47 = vpop.permute.xlu2 %575 }
 0x4c9   :  { %v566_v39 = vpop.permute.xlu1 %565 }
 0x4ca   :  { %v587_v42 = vsel %vm169_vm14, %v452_v41, %v566_v39  ;;  %v706_v39 = vperm.slane %v1094_v57, 2 }
 0x4cd   :  { %v574_v40 = vpop.permute.xlu0 %573 }
 0x4ce   :  { %v589_v43 = vsel %vm334_vm15, %v587_v42, %v574_v40  ;;  %v709_v42 = vperm.slane %v1094_v57, 3 }
 0x4d1   :  { %v582_v44 = vpop.permute.xlu1 %581 }
 0x4d2   :  { %v592_v45 = vsel %vm591_vm1, %v589_v43, %v582_v44 }
 0x4d3   :  { %855 = vmatmul.msk.f32.vlgmr.msra.gmra.mxu1 %vm36_vm0, %v592_v45 }
 0x4d5   :  { %v568_v46 = vpop.permute.xlu0 %567 }
 0x4d6   :  { %v588_v24 = vsel %vm169_vm14, %v455_v22, %v568_v46 }
 0x4d7   :  { %v590_v50 = vsel %vm334_vm15, %v588_v24, %v576_v47  ;;  %v782_v24 = vld [vmem:[%s1349_s8 + $0x78] sm:$0xff]  ;;  %v781_v47 = vld [vmem:[%s1349_s8 + $0x70] sm:$0xff] }
 0x4d8   :  { %784 = vmatpush.msra.mxu3 %v782_v24 }
 0x4da   :  { %785 = vmatpush.msra.mxu3 %v781_v47 }
 0x4f2   :  { %v584_v49 = vpop.permute.xlu1 %583 }
 0x4f3   :  { %v593_v48 = vsel %vm591_vm1, %v590_v50, %v584_v49  ;;  %v780_v50 = vld [vmem:[%s1349_s8 + $0x68] sm:$0xff] }
 0x4f4   :  { %856 = vmatmul.msk.f32.gmra.mxu1 %vm36_vm0, %v593_v48  ;;  %786 = vmatpush.msra.mxu3 %v780_v50 }
 0x550   :  { %v622_v52 = vpop.f32.mrf.mxu1 }
 0x551   :  { %v623_v53 = vadd.f32 %v622_v52, %v598_v51 }
 0x553   :  { %v1243_v54 = vadd.f32 %v623_v53, %v1050_v0 }
 0x555   :  { %v630_v56 = vsel %vm36_vm0, %v1243_v54, 0.0 }
 0x556   :  { %631 = vadd.xlane.f32.xlu0 %v630_v56 }
 0x571   :  { %v625_v58 = vpop.f32.mrf.mxu1 }
 0x572   :  { %v626_v59 = vadd.f32 %v625_v58, %v598_v51  ;;  %v779_v51 = vld [vmem:[%s1349_s8 + $0x60] sm:$0xff] }
 0x573   :  { %787 = vmatpush.msra.mxu3 %v779_v51 }
 0x574   :  { %v1248_v60 = vadd.f32 %v626_v59, %v1057_v2 }
 0x576   :  { %v633_v61 = vsel %vm36_vm0, %v1248_v60, 0.0 }
 0x577   :  { %634 = vadd.xlane.f32.xlu1 %v633_v61 }
 0x5c9   :  { %v632_v55 = vpop.xlane.xlu0 %631 }
 0x5ca   :  { %v636_v62 = vmul.f32 %v632_v55, %v1061_v10 }
 0x5cc   :  { %v638_v63 = vsub.f32 %v1243_v54, %v636_v62 }
 0x5ce   :  { %v640_v0 = vmul.f32 %v638_v63, %v638_v63 }
 0x5d0   :  { %v642_v1 = vsel %vm36_vm0, %v640_v0, 0.0 }
 0x5d1   :  { %643 = vadd.xlane.f32.xlu2 %v642_v1 }
 0x5ea   :  { %v635_v3 = vpop.xlane.xlu1 %634 }
 0x5eb   :  { %v637_v4 = vmul.f32 %v635_v3, %v1061_v10 }
 0x5ed   :  { %v1257_v5 = vsub.f32 %v1248_v60, %v637_v4 }
 0x5ef   :  { %v641_v2 = vmul.f32 %v1257_v5, %v1257_v5 }
 0x5f1   :  { %v645_v6 = vsel %vm36_vm0, %v641_v2, 0.0 }
 0x5f2   :  { %646 = vadd.xlane.f32.xlu0 %v645_v6 }
 0x644   :  { %v644_v7 = vpop.xlane.xlu2 %643 }
 0x645   :  { %v648_v8 = vmul.f32 %v644_v7, %v1061_v10 }
 0x647   :  { %v650_v9 = vadd.f32 1e-05, %v648_v8 }
 0x649   :  { %942 = vrsqrt.f32 %v650_v9  ;;  %vm659_vm2 = vcmp.eq.f32.partialorder %v650_v9, inf  ;;  %v662_v18 = vand.u32 2147483648, %v650_v9  ;;  %vm661_vm3 = vcmp.eq.f32.partialorder %v650_v9, 0.0 }
 0x64f   :  { %v943_v12 = vpop.eup %942 }
 0x650   :  { %v653_v15 = vmul.f32 %v943_v12, %v650_v9 }
 0x652   :  { %v654_v13 = vmul.f32 %v943_v12, %v653_v15  ;;  %v774_v15 = vld [vmem:[%s1349_s8 + $0x38] sm:$0xff] }
 0x654   :  { %v655_v19 = vmul.f32 0.5, %v654_v13  ;;  %v772_v13 = vld [vmem:[%s1349_s8 + $0x28] sm:$0xff] }
 0x656   :  { %v656_v14 = vsub.f32 1.5, %v655_v19  ;;  %v770_v19 = vld [vmem:[%s1349_s8 + $0x18] sm:$0xff] }
 0x658   :  { %v657_v21 = vmul.f32 %v943_v12, %v656_v14  ;;  %v776_v12 = vld [vmem:[%s1349_s8 + $0x48] sm:$0xff] }
 0x659   :  { %v768_v14 = vld [vmem:[%s1349_s8 + $0x8] sm:$0xff] }
 0x65a   :  { %v658_v23 = vmul.f32 %v657_v21, %v650_v9  ;;  %v767_v21 = vld [vmem:[%s1349_s8] sm:$0xff] }
 0x65c   :  { %v660_v25 = vsel %vm659_vm2, %v650_v9, %v658_v23  ;;  %v778_v9 = vld [vmem:[%s1349_s8 + $0x58] sm:$0xff]  ;;  %v899_v23 = vld [vmem:[%s1348_s7] ss:$0 sm:$0xff]  ;;  %s995_s7 = smov [#allocation2]  }
 0x65d   :  { %v663_v26 = vsel %vm661_vm3, %v662_v18, %v660_v25  ;;  %788 = vmatpush.msra.mxu3 %v778_v9 }
 0x65e   :  { %944 = vrcp.f32 %v663_v26  ;;  %v687_v33 = vand.u32 2147483648, %v663_v26  ;;  %v685_v35 = vand.u32 2147483647, %v663_v26  ;;  %vm681_vm5 = vweird.f32 %v663_v26 }
 0x65f   :  { %789 = vmatpush.msra.mxu3 %v777_v11 }
 0x660   :  { %v688_v37 = vor.u32 1.1754944e-38, %v687_v33  ;;  %vm686_vm7 = vcmp.eq.f32.partialorder %v685_v35, 8.507059e+37 }
 0x661   :  { %790 = vmatpush.msra.mxu3 %v776_v12 }
 0x664   :  { %v945_v27 = vpop.eup %944 }
 0x665   :  { %v647_v28 = vpop.xlane.xlu0 %646  ;;  %v677_v29 = vmul.f32 %v945_v27, %v663_v26  ;;  %vm682_vm4 = vweird.f32 %v945_v27 }
 0x666   :  { %v649_v30 = vmul.f32 %v647_v28, %v1061_v10  ;;  %vm683_vm6 = vmor %vm681_vm5, %vm682_vm4 }
 0x667   :  { %v678_v31 = vsub.f32 1.0, %v677_v29 }
 0x668   :  { %v651_v32 = vadd.f32 1e-05, %v649_v30 }
 0x669   :  { %v679_v34 = vmul.f32 %v945_v27, %v678_v31 }
 0x66a   :  { %946 = vrsqrt.f32 %v651_v32  ;;  %vm671_vm8 = vcmp.eq.f32.partialorder %v651_v32, inf  ;;  %v674_v53 = vand.u32 2147483648, %v651_v32  ;;  %vm673_vm9 = vcmp.eq.f32.partialorder %v651_v32, 0.0 }
 0x66b   :  { %v680_v36 = vadd.f32 %v945_v27, %v679_v34 }
 0x66d   :  { %v684_v38 = vsel %vm683_vm6, %v945_v27, %v680_v36 }
 0x66e   :  { %v689_v40 = vsel %vm686_vm7, %v688_v37, %v684_v38 }
 0x66f   :  { %v690_v41 = vmul.f32 %v689_v40, %v638_v63 }
 0x670   :  { %v947_v10 = vpop.eup %946 }
 0x671   :  { %v665_v43 = vmul.f32 %v947_v10, %v651_v32  ;;  %v707_v44 = vmul.f32 %v706_v39, %v690_v41 }
 0x673   :  { %v666_v45 = vmul.f32 %v947_v10, %v665_v43  ;;  %v710_v46 = vadd.f32 %v709_v42, %v707_v44 }
 0x675   :  { %v667_v22 = vmul.f32 0.5, %v666_v45  ;;  %857 = vmatmul.msk.f32.vlgmr.msra.gmra.mxu2 %vm36_vm0, %v710_v46  ;;  %v783_v45 = vperm.slane %v1094_v57, 5 }
 0x677   :  { %v668_v49 = vsub.f32 1.5, %v667_v22 }
 0x679   :  { %v669_v48 = vmul.f32 %v947_v10, %v668_v49 }
 0x67b   :  { %v670_v52 = vmul.f32 %v669_v48, %v651_v32 }
 0x67d   :  { %v672_v56 = vsel %vm671_vm8, %v651_v32, %v670_v52 }
 0x67e   :  { %v675_v58 = vsel %vm673_vm9, %v674_v53, %v672_v56 }
 0x67f   :  { %948 = vrcp.f32 %v675_v58  ;;  %v702_v62 = vand.u32 2147483648, %v675_v58  ;;  %v700_v0 = vand.u32 2147483647, %v675_v58  ;;  %vm696_vm11 = vweird.f32 %v675_v58 }
 0x681   :  { %v703_v3 = vor.u32 1.1754944e-38, %v702_v62  ;;  %vm701_vm13 = vcmp.eq.f32.partialorder %v700_v0, 8.507059e+37 }
 0x685   :  { %v949_v59 = vpop.eup %948 }
 0x686   :  { %v692_v61 = vmul.f32 %v949_v59, %v675_v58  ;;  %vm697_vm10 = vweird.f32 %v949_v59 }
 0x687   :  { %vm698_vm12 = vmor %vm696_vm11, %vm697_vm10 }
 0x688   :  { %v693_v55 = vsub.f32 1.0, %v692_v61 }
 0x68a   :  { %v694_v63 = vmul.f32 %v949_v59, %v693_v55 }
 0x68c   :  { %v695_v1 = vadd.f32 %v949_v59, %v694_v63 }
 0x68e   :  { %v699_v4 = vsel %vm698_vm12, %v949_v59, %v695_v1 }
 0x68f   :  { %v704_v2 = vsel %vm701_vm13, %v703_v3, %v699_v4 }
 0x690   :  { %v705_v6 = vmul.f32 %v704_v2, %v1257_v5  ;;  %v775_v5 = vld [vmem:[%s1349_s8 + $0x40] sm:$0xff]  ;;  %s815_s8 = sshll.u32 %s995_s7, 4  ;;  %s816_s8 = int_to_ptr.vmem [resolvable:$true] %s815_s8 }
 0x691   :  { %791 = vmatpush.msra.mxu3 %v775_v5 }
 0x692   :  { %v708_v7 = vmul.f32 %v706_v39, %v705_v6 }
 0x693   :  { %792 = vmatpush.msra.mxu3 %v774_v15 }
 0x694   :  { %v711_v8 = vadd.f32 %v709_v42, %v708_v7 }
 0x695   :  { %793 = vmatpush.msra.mxu3 %v773_v16 }
 0x696   :  { %858 = vmatmul.msk.f32.gmra.mxu2 %vm36_vm0, %v711_v8 }
 0x697   :  { %794 = vmatpush.msra.mxu3 %v772_v13 }
 0x699   :  { %795 = vmatpush.msra.mxu3 %v771_v17 }
 0x69b   :  { %796 = vmatpush.msra.mxu3 %v770_v19 }
 0x69d   :  { %797 = vmatpush.msra.mxu3 %v769_v20 }
 0x69f   :  { %798 = vmatpush.msra.mxu3 %v768_v14 }
 0x6a1   :  { %799 = vmatpush.msra.mxu3 %v767_v21 }
 0x6f8   :  { %v743_v18 = vpop.f32.mrf.mxu2 }
 0x6f9   :  { %v744_v25 = vadd.f32 %v899_v23, %v743_v18 }
 0x6fb   :  { %v751_v26 = vmul.f32 %v744_v25, %v744_v25  ;;  %v749_v32 = vmul.f32 0.5, %v744_v25 }
 0x6fd   :  { %v753_v27 = vmul.f32 %v751_v26, %v744_v25 }
 0x6ff   :  { %v755_v28 = vmul.f32 0.044715, %v753_v27 }
 0x701   :  { %v757_v29 = vadd.f32 %v755_v28, %v744_v25 }
 0x703   :  { %v759_v30 = vmul.f32 0.7978845, %v757_v29 }
 0x705   :  { %950 = vtanh.f32 %v759_v30 }
 0x70b   :  { %v951_v31 = vpop.eup %950 }
 0x70c   :  { %v763_v33 = vadd.f32 1.0, %v951_v31 }
 0x70e   :  { %v765_v34 = vmul.f32 %v763_v33, %v749_v32 }
 0x710   :  { %800 = vmatmul.f32.vlgmr.msra.gmra.mxu3 %v765_v34 }
 0x719   :  { %v746_v35 = vpop.f32.mrf.mxu2 }
 0x71a   :  { %v747_v36 = vadd.f32 %v899_v23, %v746_v35 }
 0x71c   :  { %v752_v37 = vmul.f32 %v747_v36, %v747_v36  ;;  %v750_v10 = vmul.f32 0.5, %v747_v36 }
 0x71e   :  { %v754_v38 = vmul.f32 %v752_v37, %v747_v36 }
 0x720   :  { %v756_v39 = vmul.f32 0.044715, %v754_v38 }
 0x722   :  { %v758_v40 = vadd.f32 %v756_v39, %v747_v36 }
 0x724   :  { %v760_v41 = vmul.f32 0.7978845, %v758_v40 }
 0x726   :  { %952 = vtanh.f32 %v760_v41 }
 0x72c   :  { %v953_v42 = vpop.eup %952 }
 0x72d   :  { %v764_v43 = vadd.f32 1.0, %v953_v42 }
 0x72f   :  { %v766_v44 = vmul.f32 %v764_v43, %v750_v10 }
 0x731   :  { %803 = vmatmul.f32.gmra.mxu3 %v766_v44 }
 0x793   :  { %v801_v46 = vpop.f32.mrf.mxu3 }
 0x794   :  { %v802_v22 = vadd.f32 %v801_v46, %v783_v45 }
 0x796   :  { %v807_v24 = vadd.f32 %v802_v22, %v1243_v54 }
 0x798   :  { %809 = vst.msk [vmem:[#allocation2] sm:$0xff] %vm36_vm0, %v807_v24 }
 0x7b4   :  { %v804_v47 = vpop.f32.mrf.mxu3 }
 0x7b5   :  { %v805_v49 = vadd.f32 %v804_v47, %v783_v45 }
 0x7b7   :  { %v808_v50 = vadd.f32 %v805_v49, %v1248_v60 }
 0x7b9   :  { %810 = vst.msk [vmem:[#allocation2 + $0x8] sm:$0xff] %vm36_vm0, %v808_v50 }
 0x7ba   :  { %823 = dma.vmem_to_hbm [thread:$0]  %s816_s8, 256, %s818_s24, [#allocation3], %s996_s25, %s996_s25, %s992_s23  }
 0x7bb   :  { %978 = dma.done.wait [#allocation3], 256  }
 0x7bc   :  { %979 = vsyncadd [#allocation3], 4294967040 }
 0x7bd   :  { %828 = vsyncpa [#allocation3], 1 }

</bundles_post_ra>
